<compile_context>
chip_gen: v7x
topology: tpu7x:2x2x1
jax: 0.10.0
libtpu: 0.0.40
codegen_flags: <defaults>
</compile_context>

<pallas_src>
import jax
import jax.numpy as jnp
from jax.experimental import pallas as pl
from jax.experimental.pallas import tpu as pltpu


def _ensemble_q_kernel(x_ref, w1_ref, b1_ref, w2_ref, b2_ref, w3_ref, b3_ref,
                       o_ref):
    # x_ref  : (Bb, Din)    compute dtype (bf16 by default), shared by all members
    # w1_ref : (M, Din, H)  compute dtype
    # b1_ref : (M, 1, H)    f32
    # w2_ref : (M, H, H)    compute dtype
    # b2_ref : (M, 1, H)    f32
    # w3_ref : (M, 1, H)    f32  (final layer, transposed; used on the VPU)
    # b3_ref : (M, 1)       f32
    # o_ref  : (M, Bb)      f32  (lane-dense along batch)
    M, Din, _ = w1_ref.shape
    Bb = x_ref.shape[0]

    # Broadcast the shared input once (hoisted, not inside any loop).
    x = jnp.broadcast_to(x_ref[...][None], (M, Bb, Din))

    # Layer 1: batched matmul over members, f32 accumulation, fused bias+ReLU.
    h1 = jnp.einsum("mbd,mdh->mbh", x, w1_ref[...],
                    preferred_element_type=jnp.float32)
    h1 = jnp.maximum(h1 + b1_ref[...], 0.0)

    # Layer 2: batched matmul over members.
    h2 = jnp.einsum("mbh,mhk->mbk", h1.astype(w2_ref.dtype), w2_ref[...],
                    preferred_element_type=jnp.float32)
    h2 = jnp.maximum(h2 + b2_ref[...], 0.0)

    # Layer 3 (H -> 1): VPU multiply + lane reduction instead of an N=1 MXU pass.
    q = jnp.sum(h2 * w3_ref[...], axis=-1) + b3_ref[...]      # (M, Bb)
    o_ref[...] = q.astype(o_ref.dtype)


def ensemble_q_forward(state, action, params, *, block_b=None,
                       compute_dtype=jnp.bfloat16):
    """Forward pass for all ensemble members (subset_size=None).

    state : (B, state_dim) f32
    action: (B, a_dim)     f32
    params: dict of stacked weights (see layout comment above)
    returns (n_members, B, 1) f32
    """
    w1, b1, w2, b2, w3, b3 = (params["w1"], params["b1"], params["w2"],
                              params["b2"], params["w3"], params["b3"])
    x = jnp.concatenate([state, action], axis=-1)              # (B, Din)

    M, Din, H = w1.shape
    B = x.shape[0]

    # Batch tile: full batch when small, 512-row tiles (8/128-aligned) otherwise.
    if block_b is None:
        block_b = B if B <= 512 else 512
    nb = pl.cdiv(B, block_b)

    # Cast matmul inputs to the MXU-native dtype; keep biases / tiny W3 in f32.
    x_c = x.astype(compute_dtype)
    w1_c = w1.astype(compute_dtype)
    w2_c = w2.astype(compute_dtype)
    b1_f = b1.astype(jnp.float32)                              # (M, 1, H)
    b2_f = b2.astype(jnp.float32)                              # (M, 1, H)
    w3_t = jnp.swapaxes(w3, 1, 2).astype(jnp.float32)          # (M, 1, H)
    b3_r = b3[..., 0].astype(jnp.float32)                      # (M, 1)

    grid_spec = pltpu.PrefetchScalarGridSpec(
        num_scalar_prefetch=0,
        grid=(nb,),
        in_specs=[
            pl.BlockSpec((block_b, Din), lambda i: (i, 0)),    # x (batch-tiled)
            pl.BlockSpec((M, Din, H), lambda i: (0, 0, 0)),    # W1 (resident)
            pl.BlockSpec((M, 1, H), lambda i: (0, 0, 0)),      # b1
            pl.BlockSpec((M, H, H), lambda i: (0, 0, 0)),      # W2 (resident)
            pl.BlockSpec((M, 1, H), lambda i: (0, 0, 0)),      # b2
            pl.BlockSpec((M, 1, H), lambda i: (0, 0, 0)),      # W3^T
            pl.BlockSpec((M, 1), lambda i: (0, 0)),            # b3
        ],
        out_specs=pl.BlockSpec((M, block_b), lambda i: (0, i)),  # lane-dense (M, B)
    )

    out = pl.pallas_call(
        _ensemble_q_kernel,
        out_shape=jax.ShapeDtypeStruct((M, B), jnp.float32),
        grid_spec=grid_spec,
        compiler_params=pltpu.CompilerParams(
            dimension_semantics=("parallel",)),
    )(x_c, w1_c, b1_f, w2_c, b2_f, w3_t, b3_r)

    return out[..., None]                                      # (M, B, 1)


def ensemble_q_forward_subset(state, action, params, member_inds, **kw):
    """Random-subset call (REDQ): gather a member subset, then run the kernel."""
    # TODO(synk): np.random.choice subset selection stays host-side (as in torch).
    idx = jnp.asarray(member_inds)
    sub = {k: v[idx] for k, v in params.items()}
    return ensemble_q_forward(state, action, sub, **kw)


def init_params(key, state_dim, a_dim, h_dim, n_members):
    """Deterministic PyTorch-Linear-style init (uniform +-1/sqrt(fan_in))."""
    din = state_dim + a_dim
    ks = jax.random.split(key, 6)

    def u(k, shape, fan_in):
        bound = 1.0 / jnp.sqrt(float(fan_in))
        return jax.random.uniform(k, shape, jnp.float32, -bound, bound)

    return {
        "w1": u(ks[0], (n_members, din, h_dim), din),
        "b1": u(ks[1], (n_members, 1, h_dim), din),
        "w2": u(ks[2], (n_members, h_dim, h_dim), h_dim),
        "b2": u(ks[3], (n_members, 1, h_dim), h_dim),
        "w3": u(ks[4], (n_members, h_dim, 1), h_dim),
        "b3": u(ks[5], (n_members, 1, 1), h_dim),
    }


def _reference_forward(state, action, params, compute_dtype=jnp.float32):
    """Plain-JAX reference with the same dtype casts as the kernel."""
    x = jnp.concatenate([state, action], axis=-1).astype(compute_dtype)
    w1 = params["w1"].astype(compute_dtype)
    w2 = params["w2"].astype(compute_dtype)
    h1 = jnp.einsum("bd,mdh->mbh", x, w1,
                    preferred_element_type=jnp.float32) + params["b1"]
    h1 = jnp.maximum(h1, 0.0)
    h2 = jnp.einsum("mbh,mhk->mbk", h1.astype(compute_dtype), w2,
                    preferred_element_type=jnp.float32) + params["b2"]
    h2 = jnp.maximum(h2, 0.0)
    return jnp.einsum("mbh,mho->mbo", h2, params["w3"]) + params["b3"]


if __name__ == "__main__":
    # Small shapes consistent with the module's forward.
    B, state_dim, a_dim, h_dim, n_members = 8, 12, 4, 32, 4

    key = jax.random.PRNGKey(0)
    k_state, k_action, k_params = jax.random.split(key, 3)

    state = jax.random.normal(k_state, (B, state_dim), jnp.float32)
    action = jax.random.normal(k_action, (B, a_dim), jnp.float32)
    params = init_params(k_params, state_dim, a_dim, h_dim, n_members)

    # f32 path: tight check against the pure-f32 reference.
    out_f32 = ensemble_q_forward(state, action, params,
                                 compute_dtype=jnp.float32)
    out_f32 = jax.block_until_ready(out_f32)
    ref_f32 = _reference_forward(state, action, params, jnp.float32)
    assert out_f32.shape == (n_members, B, 1)
    assert jnp.allclose(out_f32, ref_f32, atol=1e-4, rtol=1e-4)

    # bf16 path (default, MXU-native): check against a matched-cast reference.
    out_bf16 = ensemble_q_forward(state, action, params)
    out_bf16 = jax.block_until_ready(out_bf16)
    ref_bf16 = _reference_forward(state, action, params, jnp.bfloat16)
    assert out_bf16.shape == (n_members, B, 1)
    assert jnp.allclose(out_bf16, ref_bf16, atol=1e-3, rtol=1e-3)

    print("KERNEL_OK")
</pallas_src>

<mosaic_0001>
module attributes {stable_mosaic.version = 11 : i64} {
  func.func @_ensemble_q_kernel(%arg0: i32, %arg1: memref<8x16xf32, #tpu.memory_space<vmem>>, %arg2: memref<4x16x32xf32, #tpu.memory_space<vmem>>, %arg3: memref<4x1x32xf32, #tpu.memory_space<vmem>>, %arg4: memref<4x32x32xf32, #tpu.memory_space<vmem>>, %arg5: memref<4x1x32xf32, #tpu.memory_space<vmem>>, %arg6: memref<4x1x32xf32, #tpu.memory_space<vmem>>, %arg7: memref<4x1xf32, #tpu.memory_space<vmem>>, %arg8: memref<4x8xf32, #tpu.memory_space<vmem>>) attributes {dimension_semantics = [#tpu.dimension_semantics<parallel>], iteration_bounds = array<i64: 1>, scalar_prefetch = 0 : i64, scratch_operands = 0 : i64, tpu.core_type = #tpu.core_type<tc>, window_params = [{transform_indices = @transform_0, window_bounds = array<i64: 8, 16>}, {pipeline_mode = #tpu.pipeline_mode<synchronous>, transform_indices = @transform_1, window_bounds = array<i64: 4, 16, 32>}, {pipeline_mode = #tpu.pipeline_mode<synchronous>, transform_indices = @transform_2, window_bounds = array<i64: 4, 1, 32>}, {pipeline_mode = #tpu.pipeline_mode<synchronous>, transform_indices = @transform_3, window_bounds = array<i64: 4, 32, 32>}, {pipeline_mode = #tpu.pipeline_mode<synchronous>, transform_indices = @transform_4, window_bounds = array<i64: 4, 1, 32>}, {pipeline_mode = #tpu.pipeline_mode<synchronous>, transform_indices = @transform_5, window_bounds = array<i64: 4, 1, 32>}, {pipeline_mode = #tpu.pipeline_mode<synchronous>, transform_indices = @transform_6, window_bounds = array<i64: 4, 1>}, {transform_indices = @transform_7, window_bounds = array<i64: 4, 8>}]} {
    %c0 = arith.constant 0 : index
    %c0_0 = arith.constant 0 : index
    %0 = vector.load %arg1[%c0, %c0_0] : memref<8x16xf32, #tpu.memory_space<vmem>>, vector<8x16xf32>
    %1 = vector.shape_cast %0 : vector<8x16xf32> to vector<1x8x16xf32>
    %2 = vector.shape_cast %1 : vector<1x8x16xf32> to vector<1x8x16xf32>
    %3 = vector.broadcast %2 : vector<1x8x16xf32> to vector<4x8x16xf32>
    %c0_1 = arith.constant 0 : index
    %c0_2 = arith.constant 0 : index
    %c0_3 = arith.constant 0 : index
    %4 = vector.load %arg2[%c0_1, %c0_2, %c0_3] : memref<4x16x32xf32, #tpu.memory_space<vmem>>, vector<4x16x32xf32>
    "tpu.trace_start"() <{level = 10 : i32, message = "mbd,mdh->mbh"}> : () -> ()
    %cst = arith.constant dense<0.000000e+00> : vector<4x8x32xf32>
    %5 = tpu.matmul %3, %4, %cst {dimension_numbers = #tpu.dot_dimension_numbers<[2], [1], [1], [2], [0, 0, 0, 1, 1, 2], [0], [0]>} : vector<4x8x16xf32>, vector<4x16x32xf32>, vector<4x8x32xf32> -> vector<4x8x32xf32>
    "tpu.trace_stop"() : () -> ()
    %c0_4 = arith.constant 0 : index
    %c0_5 = arith.constant 0 : index
    %c0_6 = arith.constant 0 : index
    %6 = vector.load %arg3[%c0_4, %c0_5, %c0_6] : memref<4x1x32xf32, #tpu.memory_space<vmem>>, vector<4x1x32xf32>
    %7 = vector.broadcast %6 : vector<4x1x32xf32> to vector<4x8x32xf32>
    %8 = arith.addf %5, %7 : vector<4x8x32xf32>
    %cst_7 = arith.constant 0.000000e+00 : f32
    %9 = vector.broadcast %cst_7 : f32 to vector<4x8x32xf32>
    %10 = arith.maximumf %8, %9 : vector<4x8x32xf32>
    %c0_8 = arith.constant 0 : index
    %c0_9 = arith.constant 0 : index
    %c0_10 = arith.constant 0 : index
    %11 = vector.load %arg4[%c0_8, %c0_9, %c0_10] : memref<4x32x32xf32, #tpu.memory_space<vmem>>, vector<4x32x32xf32>
    "tpu.trace_start"() <{level = 10 : i32, message = "mbh,mhk->mbk"}> : () -> ()
    %cst_11 = arith.constant dense<0.000000e+00> : vector<4x8x32xf32>
    %12 = tpu.matmul %10, %11, %cst_11 {dimension_numbers = #tpu.dot_dimension_numbers<[2], [1], [1], [2], [0, 0, 0, 1, 1, 2], [0], [0]>} : vector<4x8x32xf32>, vector<4x32x32xf32>, vector<4x8x32xf32> -> vector<4x8x32xf32>
    "tpu.trace_stop"() : () -> ()
    %c0_12 = arith.constant 0 : index
    %c0_13 = arith.constant 0 : index
    %c0_14 = arith.constant 0 : index
    %13 = vector.load %arg5[%c0_12, %c0_13, %c0_14] : memref<4x1x32xf32, #tpu.memory_space<vmem>>, vector<4x1x32xf32>
    %14 = vector.broadcast %13 : vector<4x1x32xf32> to vector<4x8x32xf32>
    %15 = arith.addf %12, %14 : vector<4x8x32xf32>
    %cst_15 = arith.constant 0.000000e+00 : f32
    %16 = vector.broadcast %cst_15 : f32 to vector<4x8x32xf32>
    %17 = arith.maximumf %15, %16 : vector<4x8x32xf32>
    %c0_16 = arith.constant 0 : index
    %c0_17 = arith.constant 0 : index
    %c0_18 = arith.constant 0 : index
    %18 = vector.load %arg6[%c0_16, %c0_17, %c0_18] : memref<4x1x32xf32, #tpu.memory_space<vmem>>, vector<4x1x32xf32>
    %19 = vector.broadcast %18 : vector<4x1x32xf32> to vector<4x8x32xf32>
    %20 = arith.mulf %17, %19 : vector<4x8x32xf32>
    %cst_19 = arith.constant dense<0.000000e+00> : vector<4x8xf32>
    %21 = vector.multi_reduction <add>, %20, %cst_19 [2] : vector<4x8x32xf32> to vector<4x8xf32>
    %c0_20 = arith.constant 0 : index
    %c0_21 = arith.constant 0 : index
    %22 = vector.load %arg7[%c0_20, %c0_21] : memref<4x1xf32, #tpu.memory_space<vmem>>, vector<4x1xf32>
    %23 = vector.broadcast %22 : vector<4x1xf32> to vector<4x8xf32>
    %24 = arith.addf %21, %23 : vector<4x8xf32>
    %c0_22 = arith.constant 0 : index
    %c0_23 = arith.constant 0 : index
    %25 = vector.load %arg8[%c0_22, %c0_23] : memref<4x8xf32, #tpu.memory_space<vmem>>, vector<4x8xf32>
    tpu.vector_store %arg8[%c0_22, %c0_23], %24 {strides = array<i32>} : memref<4x8xf32, #tpu.memory_space<vmem>>, vector<4x8xf32>,
    return
  }
  func.func @transform_0(%arg0: i32) -> (i32, i32) {
    %c0_i32 = arith.constant 0 : i32
    %c0_i32_0 = arith.constant 0 : i32
    return %arg0, %c0_i32 : i32, i32
  }
  func.func @transform_1(%arg0: i32) -> (i32, i32, i32) {
    %c0_i32 = arith.constant 0 : i32
    %c0_i32_0 = arith.constant 0 : i32
    %c0_i32_1 = arith.constant 0 : i32
    %c0_i32_2 = arith.constant 0 : i32
    return %c0_i32, %c0_i32_0, %c0_i32_1 : i32, i32, i32
  }
  func.func @transform_2(%arg0: i32) -> (i32, i32, i32) {
    %c0_i32 = arith.constant 0 : i32
    %c0_i32_0 = arith.constant 0 : i32
    %c0_i32_1 = arith.constant 0 : i32
    %c0_i32_2 = arith.constant 0 : i32
    return %c0_i32, %c0_i32_0, %c0_i32_1 : i32, i32, i32
  }
  func.func @transform_3(%arg0: i32) -> (i32, i32, i32) {
    %c0_i32 = arith.constant 0 : i32
    %c0_i32_0 = arith.constant 0 : i32
    %c0_i32_1 = arith.constant 0 : i32
    %c0_i32_2 = arith.constant 0 : i32
    return %c0_i32, %c0_i32_0, %c0_i32_1 : i32, i32, i32
  }
  func.func @transform_4(%arg0: i32) -> (i32, i32, i32) {
    %c0_i32 = arith.constant 0 : i32
    %c0_i32_0 = arith.constant 0 : i32
    %c0_i32_1 = arith.constant 0 : i32
    %c0_i32_2 = arith.constant 0 : i32
    return %c0_i32, %c0_i32_0, %c0_i32_1 : i32, i32, i32
  }
  func.func @transform_5(%arg0: i32) -> (i32, i32, i32) {
    %c0_i32 = arith.constant 0 : i32
    %c0_i32_0 = arith.constant 0 : i32
    %c0_i32_1 = arith.constant 0 : i32
    %c0_i32_2 = arith.constant 0 : i32
    return %c0_i32, %c0_i32_0, %c0_i32_1 : i32, i32, i32
  }
  func.func @transform_6(%arg0: i32) -> (i32, i32) {
    %c0_i32 = arith.constant 0 : i32
    %c0_i32_0 = arith.constant 0 : i32
    %c0_i32_1 = arith.constant 0 : i32
    return %c0_i32, %c0_i32_0 : i32, i32
  }
  func.func @transform_7(%arg0: i32) -> (i32, i32) {
    %c0_i32 = arith.constant 0 : i32
    %c0_i32_0 = arith.constant 0 : i32
    return %c0_i32, %arg0 : i32, i32
  }
}

</mosaic_0001>

<bundles_post_ra>
// kernel: tpu_custom_call.1
= control target key start
LH: loop header
LB: loop body
LE: loop exit
PB: predicated region body
PF: predicated region fallthrough
CT: control target
= control target key end

     0   :  { %12 = vsyncpa [#allocation3], 0  ;;  %s1313_s0 = inlined_call_operand.hbm [shape: f32[8,16], index: 0, kind: input, shape index: {}]   ;;  %s1314_s1 = inlined_call_operand.hbm [shape: f32[4,16,32], index: 1, kind: input, shape index: {}]   ;;  %s1315_s2 = inlined_call_operand.vmem [shape: f32[4,1,32], index: 2, kind: input, shape index: {}]   ;;  %s1316_s3 = inlined_call_operand.hbm [shape: f32[4,32,32], index: 3, kind: input, shape index: {}]   ;;  %s1317_s4 = inlined_call_operand.vmem [shape: f32[4,1,32], index: 4, kind: input, shape index: {}]   ;;  %s1318_s5 = inlined_call_operand.vmem [shape: f32[4,1,32], index: 5, kind: input, shape index: {}]   ;;  %s1319_s6 = inlined_call_operand.vmem [shape: f32[4,1], index: 6, kind: input, shape index: {}]   ;;  %s1320_s7 = inlined_call_operand.hbm [shape: f32[4,8], index: 7, kind: output, shape index: {}]  }
   0x1   :  { %13 = vsyncpa [#allocation6], 0 }
   0x2   :  { %14 = vsyncpa [#allocation4], 0  ;;  %s1130_s24 = smov [#allocation5]   ;;  %s1036_s28 = scalar_lea.hbm %s1314_s1, 1024 }
   0x3   :  { %s30_s25 = sshll.u32 %s1130_s24, 4  ;;  %p1037_p0 = scmp.ne.s32.totalorder %s1314_s1, %s1036_s28  ;;  %s31_s25 = int_to_ptr.vmem [resolvable:$true] %s30_s25 }
   0x4   :  { %p1040_p1 = scmp.lt.u32.totalorder %s1036_s28, %s1314_s1 }
   0x6   :  { %p1042_p2 = pnand %p1040_p1, %p1037_p0 }
   0x8   :  { %1045 = shalt.err (!%p1042_p2)
}
   0x9   :  { %s1046_s10 = scalar_lea.vmem %s31_s25, 1024  ;;  %p1051_p4 = scmp.lt.s32.totalorder %s31_s25, %s31_s25 }
   0xa   :  { %p1047_p3 = scmp.ne.s32.totalorder %s31_s25, %s1046_s10  ;;  %p1052_p5 = scmp.lt.s32.totalorder %s1046_s10, %s1046_s10 }
   0xc   :  { %p1053_p6 = por %p1052_p5, %p1051_p4 }
   0xe   :  { %p1054_p7 = pnand %p1053_p6, %p1047_p3 }
  0x10   :  { %1057 = shalt.err (!%p1054_p7)
}
  0x11   :  { %s1131_s11 = smov 128   ;;  %s1132_s12 = smov 8  }
  0x12   :  { %36 = dma.hbm_to_vmem [thread:$0]  %s1314_s1, 1024, %s31_s25, [#allocation6], %s1131_s11, %s1131_s11, %s1132_s12  }
  0x13   :  { %s1133_s15 = smov [#allocation2]   ;;  %s1134_s17 = smov [#allocation7]  }
  0x14   :  { %s21_s16 = sshll.u32 %s1133_s15, 4  ;;  %s44_s18 = sshll.u32 %s1134_s17, 4  ;;  %s22_s16 = int_to_ptr.vmem [resolvable:$true] %s21_s16  ;;  %s45_s18 = int_to_ptr.vmem [resolvable:$true] %s44_s18 }
  0x15   :  { %s1058_s21 = scalar_lea.hbm %s1313_s0, 128 }
  0x16   :  { %p1059_p8 = scmp.ne.s32.totalorder %s1313_s0, %s1058_s21  ;;  %p1062_p9 = scmp.lt.u32.totalorder %s1058_s21, %s1313_s0 }
  0x18   :  { %p1064_p10 = pnand %p1062_p9, %p1059_p8 }
  0x1a   :  { %1067 = shalt.err (!%p1064_p10)
}
  0x1b   :  { %s1068_s1 = scalar_lea.vmem %s22_s16, 128  ;;  %p1073_p12 = scmp.lt.s32.totalorder %s22_s16, %s22_s16 }
  0x1c   :  { %p1069_p11 = scmp.ne.s32.totalorder %s22_s16, %s1068_s1  ;;  %p1074_p13 = scmp.lt.s32.totalorder %s1068_s1, %s1068_s1 }
  0x1e   :  { %p1075_p0 = por %p1074_p13, %p1073_p12 }
  0x20   :  { %p1076_p1 = pnand %p1075_p0, %p1069_p11 }
  0x22   :  { %1079 = shalt.err (!%p1076_p1)
}
  0x23   :  { %24 = dma.hbm_to_vmem [thread:$0]  %s1313_s0, 128, %s22_s16, [#allocation3]  }
  0x24   :  { %s1080_s30 = scalar_lea.hbm %s1316_s3, 2048 }
  0x25   :  { %p1081_p2 = scmp.ne.s32.totalorder %s1316_s3, %s1080_s30  ;;  %p1084_p3 = scmp.lt.u32.totalorder %s1080_s30, %s1316_s3 }
  0x27   :  { %p1086_p4 = pnand %p1084_p3, %p1081_p2 }
  0x29   :  { %1089 = shalt.err (!%p1086_p4)
}
  0x2a   :  { %s1090_s14 = scalar_lea.vmem %s45_s18, 2048  ;;  %p1095_p6 = scmp.lt.s32.totalorder %s45_s18, %s45_s18 }
  0x2b   :  { %p1091_p5 = scmp.ne.s32.totalorder %s45_s18, %s1090_s14  ;;  %p1096_p7 = scmp.lt.s32.totalorder %s1090_s14, %s1090_s14 }
  0x2d   :  { %p1097_p8 = por %p1096_p7, %p1095_p6 }
  0x2f   :  { %p1098_p9 = pnand %p1097_p8, %p1091_p5 }
  0x31   :  { %1101 = shalt.err (!%p1098_p9)
}
  0x32   :  { %50 = dma.hbm_to_vmem [thread:$0]  %s1316_s3, 2048, %s45_s18, [#allocation6], %s1131_s11, %s1131_s11, %s1132_s12  }
  0x33   :  { %1124 = dma.done.wait [#allocation3], 128  }
  0x34   :  { %1125 = vsyncadd [#allocation3], 4294967168 }
  0x35   :  { %1126 = dma.done.wait [#allocation6], 3072  }
  0x36   :  { %1127 = vsyncadd [#allocation6], 4294964224  ;;  %v1135_v0 = vmov 0.0|0.0   ;;  %vm1136_vm0 = vmmov 0   ;;  %v1137_v1 = vmov 0.0   ;;  %v67_v2 = vld [vmem:[#allocation5] sm:$0xff] }
  0x37   :  { %988 = vmatprep.subr.bf16.mxu0 %v1135_v0  ;;  %920 = vmatprep.mubr.msk.f32.mxu0 %vm1136_vm0, %v1137_v1  ;;  %v68_v3 = vld [vmem:[#allocation5 + $0x8] sm:$0xff]  ;;  %v69_v5 = vld [vmem:[#allocation5 + $0x10] sm:$0xff]  ;;  %v70_v6 = vld [vmem:[#allocation5 + $0x18] sm:$0xff]  ;;  %vm103_vm1 = vcmask 130048   ;;  %vm435_vm2 = vcmask 261120   ;;  %v1138_v59 = vmov 0  }
  0x38   :  { %991 = vmatprep.subr.bf16.mxu1 %v1135_v0  ;;  %927 = vmatprep.mubr.msk.f32.mxu1 %vm1136_vm0, %v1137_v1  ;;  %v989_v4 = vpack.c.bf16 %v68_v3, %v67_v2  ;;  %v71_v7 = vld [vmem:[#allocation5 + $0x20] sm:$0xff]  ;;  %v992_v8 = vpack.c.bf16 %v70_v6, %v69_v5  ;;  %v72_v9 = vld [vmem:[#allocation5 + $0x28] sm:$0xff]  ;;  %v73_v10 = vld [vmem:[#allocation5 + $0x30] sm:$0xff]  ;;  %vm839_vm3 = vcmask 1041409   ;;  %vm841_vm4 = vcmask 1042434  }
  0x39   :  { %v74_v11 = vld [vmem:[#allocation5 + $0x38] sm:$0xff]  ;;  %v995_v13 = vpack.c.bf16 %v72_v9, %v71_v7  ;;  %v391_v15 = vld [vmem:[#allocation7] sm:$0xff]  ;;  %v392_v16 = vld [vmem:[#allocation7 + $0x8] sm:$0xff]  ;;  %1034 = vset.pattern.permute.xlu0 %v1138_v59  ;;  %1035 = vset.pattern.permute.xlu1 %v1138_v59  ;;  %vm843_vm5 = vcmask 1043459   ;;  %vm846_vm6 = vcmask 60416  }
  0x3a   :  { %990 = vmatpush3.bf16.msra.mxu0 %v989_v4  ;;  %v66_v12 = vld [vmem:[#allocation2] sm:$0xff]  ;;  %993 = vmatpush3.bf16.msra.mxu1 %v992_v8  ;;  %v998_v14 = vpack.c.bf16 %v74_v11, %v73_v10  ;;  %v1001_v17 = vpack.c.bf16 %v392_v16, %v391_v15  ;;  %v395_v18 = vld [vmem:[#allocation7 + $0x20] sm:$0xff]  ;;  %v396_v19 = vld [vmem:[#allocation7 + $0x28] sm:$0xff] }
  0x3b   :  { %994 = vmatprep.subr.bf16.mxu0 %v1135_v0  ;;  %997 = vmatprep.subr.bf16.mxu1 %v1135_v0  ;;  %v1007_v20 = vpack.c.bf16 %v396_v19, %v395_v18  ;;  %v393_v21 = vld [vmem:[#allocation7 + $0x10] sm:$0xff]  ;;  %v394_v22 = vld [vmem:[#allocation7 + $0x18] sm:$0xff]  ;;  %v399_v29 = vld [vmem:[#allocation7 + $0x40] sm:$0xff] }
  0x3c   :  { %v1004_v23 = vpack.c.bf16 %v394_v22, %v393_v21  ;;  %v397_v24 = vld [vmem:[#allocation7 + $0x30] sm:$0xff]  ;;  %v398_v25 = vld [vmem:[#allocation7 + $0x38] sm:$0xff]  ;;  %v400_v30 = vld [vmem:[#allocation7 + $0x48] sm:$0xff] }
  0x3d   :  { %921 = vmatmul.mubr.msk.f32.vlgmr.msra.gmra.mrb[0].mxu0 %vm103_vm1, %v66_v12  ;;  %928 = vmatmul.mubr.msk.f32.vlgmr.msra.gmra.mrb[0].mxu1 %vm103_vm1, %v66_v12  ;;  %v1010_v26 = vpack.c.bf16 %v398_v25, %v397_v24  ;;  %v864_v27 = vld [vmem:[%s1315_s2] ss:$0 sm:$0xff]  ;;  %v865_v28 = vld [vmem:[%s1315_s2 + $0x1] ss:$0 sm:$0xff]  ;;  %v403_v32 = vld [vmem:[#allocation7 + $0x60] sm:$0xff]  ;;  %v1013_v39 = vpack.c.bf16 %v400_v30, %v399_v29  ;;  %v781_v29 = vlaneseq }
  0x3e   :  { %996 = vmatpush3.bf16.msra.mxu0 %v995_v13  ;;  %934 = vmatprep.mubr.msk.f32.mxu0 %vm1136_vm0, %v1137_v1  ;;  %v404_v33 = vld [vmem:[#allocation7 + $0x68] sm:$0xff]  ;;  %v866_v40 = vld [vmem:[%s1315_s2 + $0x2] ss:$0 sm:$0xff]  ;;  %v401_v42 = vld [vmem:[#allocation7 + $0x50] sm:$0xff] }
  0x3f   :  { %999 = vmatpush3.bf16.msra.mxu1 %v998_v14  ;;  %941 = vmatprep.mubr.msk.f32.mxu1 %vm1136_vm0, %v1137_v1  ;;  %v402_v43 = vld [vmem:[#allocation7 + $0x58] sm:$0xff]  ;;  %v1019_v44 = vpack.c.bf16 %v404_v33, %v403_v32  ;;  %v405_v48 = vld [vmem:[#allocation7 + $0x70] sm:$0xff]  ;;  %v782_v30 = vshrl.u32 %v781_v29, 7 }
  0x40   :  { %1000 = vmatprep.subr.bf16.mxu0 %v1135_v0  ;;  %1006 = vmatprep.subr.bf16.mxu1 %v1135_v0  ;;  %v867_v45 = vld [vmem:[%s1315_s2 + $0x3] ss:$0 sm:$0xff]  ;;  %v1016_v53 = vpack.c.bf16 %v402_v43, %v401_v42  ;;  %v872_v60 = vld [vmem:[%s1317_s4] ss:$0 sm:$0xff]  ;;  %v873_v61 = vld [vmem:[%s1317_s4 + $0x1] ss:$0 sm:$0xff] }
  0x41   :  { %935 = vmatmul.mubr.msk.f32.vlgmr.msra.gmra.mrb[2].mxu0 %vm103_vm1, %v66_v12  ;;  %v406_v49 = vld [vmem:[#allocation7 + $0x78] sm:$0xff] }
  0x42   :  { %942 = vmatmul.mubr.msk.f32.vlgmr.msra.gmra.mrb[2].mxu1 %vm103_vm1, %v66_v12  ;;  %1002 = vmatpush3.bf16.msra.mxu0 %v1001_v17  ;;  %v1022_v56 = vpack.c.bf16 %v406_v49, %v405_v48  ;;  %v880_v4 = vld [vmem:[%s1318_s5] ss:$0 sm:$0xff]  ;;  %v881_v6 = vld [vmem:[%s1318_s5 + $0x1] ss:$0 sm:$0xff]  ;;  %v874_v9 = vld [vmem:[%s1317_s4 + $0x2] ss:$0 sm:$0xff] }
  0x43   :  { %1003 = vmatprep.subr.bf16.mxu0 %v1135_v0  ;;  %952 = vmatprep.mubr.msk.f32.mxu0 %vm1136_vm0, %v1137_v1  ;;  %v875_v12 = vld [vmem:[%s1317_s4 + $0x3] ss:$0 sm:$0xff]  ;;  %v882_v19 = vld [vmem:[%s1318_s5 + $0x2] ss:$0 sm:$0xff] }
  0x44   :  { %963 = vmatprep.mubr.msk.f32.mxu1 %vm1136_vm0, %v1137_v1  ;;  %1008 = vmatpush3.bf16.msra.mxu1 %v1007_v20  ;;  %v883_v22 = vld [vmem:[%s1318_s5 + $0x3] ss:$0 sm:$0xff]  ;;  %s1139_s5 = smov [#allocation8]  }
  0x45   :  { %1009 = vmatprep.subr.bf16.mxu1 %v1135_v0 }
  0x46   :  { %1005 = vmatpush3.bf16.msra.mxu0 %v1004_v23 }
  0x47   :  { %1012 = vmatprep.subr.bf16.mxu0 %v1135_v0 }
  0x48   :  { %1011 = vmatpush3.bf16.msra.mxu1 %v1010_v26 }
  0x49   :  { %1018 = vmatprep.subr.bf16.mxu1 %v1135_v0 }
 0x110   :  { %v173_v31 = vpop.f32.mrb[0].mxu0  ;;  %v243_v36 = vpop.f32.mrb[0].mxu1 }
 0x111   :  { %v174_v34 = vadd.f32 %v864_v27, %v173_v31  ;;  %v922_v35 = vpop.f32.mrb[1].mxu0  ;;  %v244_v37 = vadd.f32 %v865_v28, %v243_v36  ;;  %v929_v38 = vpop.f32.mrb[1].mxu1  ;;  %v776_v28 = vld [vmem:[%s1319_s6] sm:$0xf]  ;;  %v822_v31 = vand.u32 127, %v781_v29  ;;  %v787_v36 = vsub.s32 1, %v782_v30 }
 0x112   :  { %v783_v35 = vsub.s32 0, %v782_v30  ;;  %s854_s6 = sshll.u32 %s1139_s5, 4  ;;  %s855_s6 = int_to_ptr.vmem [resolvable:$true] %s854_s6 }
 0x113   :  { %v387_v41 = vmax.f32 %v174_v34, 0.0  ;;  %v388_v46 = vmax.f32 %v244_v37, 0.0  ;;  %v825_v32 = vsub.s32 %v822_v31, %v782_v30  ;;  %s1102_s0 = scalar_lea.vmem %s855_s6, 64  ;;  %p1107_p11 = scmp.lt.s32.totalorder %s855_s6, %s855_s6 }
 0x114   :  { %v313_v47 = vpop.f32.mrb[2].mxu0  ;;  %p1103_p10 = scmp.ne.s32.totalorder %s855_s6, %s1102_s0  ;;  %p1108_p12 = scmp.lt.s32.totalorder %s1102_s0, %s1102_s0 }
 0x115   :  { %953 = vmatmul.mubr.msk.f32.vlgmr.msra.gmra.mrb[4].mxu0 %vm435_vm2, %v387_v41  ;;  %v314_v50 = vadd.f32 %v866_v40, %v313_v47  ;;  %v383_v51 = vpop.f32.mrb[2].mxu1  ;;  %v936_v52 = vpop.f32.mrb[3].mxu0  ;;  %964 = vmatmul.mubr.msk.f32.vlgmr.msra.gmra.mrb[4].mxu1 %vm435_vm2, %v388_v46 }
 0x116   :  { %1014 = vmatpush3.bf16.msra.mxu0 %v1013_v39  ;;  %v384_v54 = vadd.f32 %v867_v45, %v383_v51  ;;  %v943_v55 = vpop.f32.mrb[3].mxu1  ;;  %1020 = vmatpush3.bf16.msra.mxu1 %v1019_v44  ;;  %v791_v39 = vsub.s32 2, %v782_v30  ;;  %v795_v44 = vsub.s32 3, %v782_v30  ;;  %p1109_p13 = por %p1108_p12, %p1107_p11 }
 0x117   :  { %1015 = vmatprep.subr.bf16.mxu0 %v1135_v0  ;;  %974 = vmatprep.mubr.msk.f32.mxu0 %vm1136_vm0, %v1137_v1  ;;  %v389_v57 = vmax.f32 %v314_v50, 0.0 }
 0x118   :  { %1021 = vmatprep.subr.bf16.mxu1 %v1135_v0  ;;  %985 = vmatprep.mubr.msk.f32.mxu1 %vm1136_vm0, %v1137_v1  ;;  %v390_v58 = vmax.f32 %v384_v54, 0.0  ;;  %p1110_p0 = pnand %p1109_p13, %p1103_p10 }
 0x11a   :  { %1017 = vmatpush3.bf16.msra.mxu0 %v1016_v53  ;;  %1023 = vmatpush3.bf16.msra.mxu1 %v1022_v56 }
 0x11d   :  { %975 = vmatmul.mubr.msk.f32.vlgmr.msra.gmra.mrb[6].mxu0 %vm435_vm2, %v389_v57  ;;  %986 = vmatmul.mubr.msk.f32.vlgmr.msra.gmra.mrb[6].mxu1 %vm435_vm2, %v390_v58 }
 0x1e8   :  { %v505_v62 = vpop.f32.mrb[4].mxu0  ;;  %v578_v1 = vpop.f32.mrb[4].mxu1 }
 0x1e9   :  { %v506_v63 = vadd.f32 %v872_v60, %v505_v62  ;;  %v954_v0 = vpop.f32.mrb[5].mxu0  ;;  %v579_v2 = vadd.f32 %v873_v61, %v578_v1  ;;  %v965_v3 = vpop.f32.mrb[5].mxu1 }
 0x1eb   :  { %v728_v5 = vmax.f32 %v506_v63, 0.0  ;;  %v729_v7 = vmax.f32 %v579_v2, 0.0 }
 0x1ed   :  { %v760_v8 = vmul.f32 %v880_v4, %v728_v5  ;;  %v761_v10 = vmul.f32 %v881_v6, %v729_v7 }
 0x1ef   :  { %v764_v11 = vsel %vm435_vm2, %v760_v8, 0.0  ;;  %v767_v15 = vsel %vm435_vm2, %v761_v10, 0.0 }
 0x1f0   :  { %765 = vadd.xlane.f32.xlu0 %v764_v11  ;;  %v651_v13 = vpop.f32.mrb[6].mxu0  ;;  %v724_v16 = vpop.f32.mrb[6].mxu1 }
 0x1f1   :  { %v652_v14 = vadd.f32 %v874_v9, %v651_v13  ;;  %v976_v17 = vpop.f32.mrb[7].mxu0  ;;  %v725_v18 = vadd.f32 %v875_v12, %v724_v16  ;;  %v987_v20 = vpop.f32.mrb[7].mxu1 }
 0x1f3   :  { %v730_v21 = vmax.f32 %v652_v14, 0.0  ;;  %v731_v23 = vmax.f32 %v725_v18, 0.0 }
 0x1f4   :  { %768 = vadd.xlane.f32.xlu0 %v767_v15 }
 0x1f5   :  { %v762_v24 = vmul.f32 %v882_v19, %v730_v21  ;;  %v763_v25 = vmul.f32 %v883_v22, %v731_v23 }
 0x1f7   :  { %v770_v26 = vsel %vm435_vm2, %v762_v24, 0.0  ;;  %v773_v27 = vsel %vm435_vm2, %v763_v25, 0.0 }
 0x1f8   :  { %771 = vadd.xlane.f32.xlu1 %v770_v26 }
 0x1fc   :  { %774 = vadd.xlane.f32.xlu1 %v773_v27 }
 0x20a   :  { %779 = vperm.xlu0 %1034, %v776_v28  }
 0x27d   :  { %v766_v33 = vpop.xlane.xlu0 %765 }
 0x281   :  { %v769_v34 = vpop.xlane.xlu0 %768 }
 0x285   :  { %v772_v42 = vpop.xlane.xlu1 %771 }
 0x289   :  { %v780_v37 = vpop.permute.xlu0 %779  ;;  %v775_v48 = vpop.xlane.xlu1 %774 }
 0x28a   :  { %v784_v38 = vrot.slane %v780_v37, %v783_v35  ;;  %v788_v40 = vrot.slane %v780_v37, %v787_v36  ;;  %v792_v43 = vrot.slane %v780_v37, %v791_v39  ;;  %v796_v46 = vrot.slane %v780_v37, %v795_v44 }
 0x28c   :  { %v801_v41 = vadd.f32 %v784_v38, %v766_v33  ;;  %v802_v45 = vadd.f32 %v788_v40, %v769_v34  ;;  %v803_v47 = vadd.f32 %v792_v43, %v772_v42  ;;  %v804_v49 = vadd.f32 %v796_v46, %v775_v48 }
 0x28e   :  { %810 = vperm.xlu1 %1035, %v801_v41  }
 0x292   :  { %813 = vperm.xlu1 %1035, %v802_v45  }
 0x296   :  { %816 = vperm.xlu1 %1035, %v803_v47  }
 0x29a   :  { %819 = vperm.xlu1 %1035, %v804_v49  }
 0x30d   :  { %v811_v50 = vpop.permute.xlu1 %810 }
 0x30e   :  { %v826_v55 = vrot.slane %v811_v50, %v825_v32 }
 0x311   :  { %v814_v51 = vpop.permute.xlu1 %813 }
 0x312   :  { %v830_v53 = vrot.slane %v814_v51, %v825_v32 }
 0x314   :  { %v840_v57 = vsel %vm839_vm3, %v830_v53, %v826_v55 }
 0x315   :  { %v817_v52 = vpop.permute.xlu1 %816 }
 0x316   :  { %v834_v54 = vrot.slane %v817_v52, %v825_v32 }
 0x318   :  { %v842_v59 = vsel %vm841_vm4, %v834_v54, %v840_v57 }
 0x319   :  { %v820_v56 = vpop.permute.xlu1 %819 }
 0x31a   :  { %v838_v58 = vrot.slane %v820_v56, %v825_v32 }
 0x31c   :  { %v844_v60 = vsel %vm843_vm5, %v838_v58, %v842_v59 }
 0x31d   :  { %847 = vst.msk [vmem:[#allocation8] sm:$0xf] %vm846_vm6, %v844_v60 }
 0x31e   :  { %1113 = shalt.err (!%p1110_p0)
}
 0x31f   :  { %s1114_s11 = scalar_lea.hbm %s1320_s7, 64 }
 0x320   :  { %p1115_p1 = scmp.ne.s32.totalorder %s1320_s7, %s1114_s11  ;;  %p1118_p2 = scmp.lt.u32.totalorder %s1114_s11, %s1320_s7 }
 0x322   :  { %p1120_p3 = pnand %p1118_p2, %p1115_p1 }
 0x324   :  { %1123 = shalt.err (!%p1120_p3)
}
 0x325   :  { %857 = dma.vmem_to_hbm [thread:$0]  %s855_s6, 64, %s1320_s7, [#allocation4]  }
 0x326   :  { %1128 = dma.done.wait [#allocation4], 64  }
 0x327   :  { %1129 = vsyncadd [#allocation4], 4294967232 }
 0x328   :  { %861 = vsyncpa [#allocation3], 1 }
 0x329   :  { %862 = vsyncpa [#allocation6], 1 }
 0x32a   :  { %863 = vsyncpa [#allocation4], 1 }

</bundles_post_ra>
